<compile_context>
chip_gen: v7x
topology: tpu7x:2x2x1
jax: 0.10.0
libtpu: 0.0.40
codegen_flags: <defaults>
</compile_context>

<pallas_src>
import functools

import jax
import jax.numpy as jnp
from jax.experimental import pallas as pl
from jax.experimental.pallas import tpu as pltpu

LANE = 128  # pad hidden/output feature dims to a full lane width


def _round_up(x, m):
    return ((x + m - 1) // m) * m


def _mlp_kernel(x_ref, w1_ref, b1_ref, w2_ref, b2_ref, w3_ref, b3_ref, o_ref):
    # layer 1: Linear -> ReLU (Dropout is identity at inference)
    x = x_ref[...]  # (TB, D_in) bf16
    h = jnp.dot(x, w1_ref[...], preferred_element_type=jnp.float32)
    h = jnp.maximum(h + b1_ref[...], 0.0)
    # layer 2: Linear -> ReLU
    h = jnp.dot(h.astype(jnp.bfloat16), w2_ref[...],
                preferred_element_type=jnp.float32)
    h = jnp.maximum(h + b2_ref[...], 0.0)
    # output layer: Linear (no activation); padded lanes carry zeros
    out = jnp.dot(h.astype(jnp.bfloat16), w3_ref[...],
                  preferred_element_type=jnp.float32) + b3_ref[...]
    o_ref[...] = out  # (TB, 128) f32, lane-dense store


def dnn_forward(x, kparams, output_size, *, tb=512):
    """Fused MLP forward.

    x: (B, input_size) f32.  kparams: padded/bf16 kernel params from pad_params().
    Returns (B, output_size) f32.
    """
    B, D = x.shape
    w1, b1 = kparams["w1"], kparams["b1"]
    w2, b2 = kparams["w2"], kparams["b2"]
    w3, b3 = kparams["w3"], kparams["b3"]
    H1, H2, PO = w1.shape[1], w2.shape[1], w3.shape[1]

    # Batch tile: multiple of 16 (bf16 sublane packing); pad B up to a multiple of TB.
    TB = min(tb, _round_up(B, 16))
    Bp = _round_up(B, TB)
    xp = x if Bp == B else jnp.pad(x, ((0, Bp - B), (0, 0)))
    xp = xp.astype(jnp.bfloat16)

    grid = (Bp // TB,)

    const2d = lambda i: (0, 0)
    in_specs = [
        pl.BlockSpec((TB, D), lambda i: (i, 0)),   # x: streamed over batch
        pl.BlockSpec((D, H1), const2d),            # weights/biases: VMEM-resident
        pl.BlockSpec((1, H1), const2d),
        pl.BlockSpec((H1, H2), const2d),
        pl.BlockSpec((1, H2), const2d),
        pl.BlockSpec((H2, PO), const2d),
        pl.BlockSpec((1, PO), const2d),
    ]
    out_specs = pl.BlockSpec((TB, PO), lambda i: (i, 0))

    flops = 2 * Bp * (D * H1 + H1 * H2 + H2 * PO)
    bytes_accessed = (
        xp.size * 2
        + (w1.size + w2.size + w3.size) * 2
        + (b1.size + b2.size + b3.size) * 4
        + Bp * PO * 4
    )

    out = pl.pallas_call(
        _mlp_kernel,
        out_shape=jax.ShapeDtypeStruct((Bp, PO), jnp.float32),
        grid=grid,
        in_specs=in_specs,
        out_specs=out_specs,
        compiler_params=pltpu.CompilerParams(
            dimension_semantics=("parallel",),
        ),
        cost_estimate=pl.CostEstimate(
            flops=flops, transcendentals=0, bytes_accessed=bytes_accessed
        ),
    )(xp, w1, b1, w2, b2, w3, b3)

    return out[:B, :output_size]


def init_params(key, input_size, hidden_sizes, output_size):
    """Deterministic f32 init mimicking nn.Linear's U(-1/sqrt(fan_in), 1/sqrt(fan_in)).

    Weights stored as (in, out) == PyTorch weight.T (MXU-friendly).
    """
    dims = [input_size] + list(hidden_sizes) + [output_size]
    params = {}
    for i, (din, dout) in enumerate(zip(dims[:-1], dims[1:]), start=1):
        key, kw, kb = jax.random.split(key, 3)
        bound = 1.0 / (din ** 0.5)
        params[f"w{i}"] = jax.random.uniform(kw, (din, dout), jnp.float32, -bound, bound)
        params[f"b{i}"] = jax.random.uniform(kb, (1, dout), jnp.float32, -bound, bound)
    return params


def pad_params(params, input_size, hidden_sizes, output_size):
    """Zero-pad hidden/output dims to 128 lanes; cast weights to bf16 (biases stay f32)."""
    def pad2(a, rows, cols):
        r, c = a.shape
        return jnp.pad(a, ((0, rows - r), (0, cols - c)))

    h1p = _round_up(hidden_sizes[0], LANE)
    h2p = _round_up(hidden_sizes[1], LANE)
    op = _round_up(output_size, LANE)
    return {
        "w1": pad2(params["w1"], input_size, h1p).astype(jnp.bfloat16),
        "b1": pad2(params["b1"], 1, h1p),
        "w2": pad2(params["w2"], h1p, h2p).astype(jnp.bfloat16),
        "b2": pad2(params["b2"], 1, h2p),
        "w3": pad2(params["w3"], h2p, op).astype(jnp.bfloat16),
        "b3": pad2(params["b3"], 1, op),
    }


def dnn_reference(x, params):
    h = jnp.maximum(x @ params["w1"] + params["b1"], 0.0)
    h = jnp.maximum(h @ params["w2"] + params["b2"], 0.0)
    return h @ params["w3"] + params["b3"]


if __name__ == "__main__":
    # Module config: DNN(input_size=32, hidden_sizes=[64, 48], output_size=16)
    input_size, hidden_sizes, output_size = 32, [64, 48], 16
    batch = 8  # NOTE: at B=8 this is launch-overhead bound; batch requests for real wins.

    key = jax.random.PRNGKey(0)
    key_x, key_p = jax.random.split(key)
    x = jax.random.normal(key_x, (batch, input_size), dtype=jnp.float32)
    params = init_params(key_p, input_size, hidden_sizes, output_size)
    kparams = pad_params(params, input_size, hidden_sizes, output_size)

    fwd = jax.jit(functools.partial(dnn_forward, output_size=output_size))
    out = fwd(x, kparams)
    jax.block_until_ready(out)

    ref = dnn_reference(x, params)
    assert out.shape == (batch, output_size), out.shape
    # bf16 matmul operands (f32 accumulation) -> loose tolerance vs full-f32 reference.
    assert jnp.allclose(out, ref, atol=5e-2, rtol=5e-2), "mismatch vs reference"

    print("KERNEL_OK")
</pallas_src>

<mosaic_0001>
module attributes {stable_mosaic.version = 11 : i64} {
  func.func @_mlp_kernel(%arg0: i32, %arg1: memref<16x32xbf16, #tpu.memory_space<vmem>>, %arg2: memref<32x128xbf16, #tpu.memory_space<vmem>>, %arg3: memref<1x128xf32, #tpu.memory_space<vmem>>, %arg4: memref<128x128xbf16, #tpu.memory_space<vmem>>, %arg5: memref<1x128xf32, #tpu.memory_space<vmem>>, %arg6: memref<128x128xbf16, #tpu.memory_space<vmem>>, %arg7: memref<1x128xf32, #tpu.memory_space<vmem>>, %arg8: memref<16x128xf32, #tpu.memory_space<vmem>>) attributes {dimension_semantics = [#tpu.dimension_semantics<parallel>], iteration_bounds = array<i64: 1>, scalar_prefetch = 0 : i64, scratch_operands = 0 : i64, tpu.core_type = #tpu.core_type<tc>, window_params = [{transform_indices = @transform_0, window_bounds = array<i64: 16, 32>}, {pipeline_mode = #tpu.pipeline_mode<synchronous>, transform_indices = @transform_1, window_bounds = array<i64: 32, 128>}, {pipeline_mode = #tpu.pipeline_mode<synchronous>, transform_indices = @transform_2, window_bounds = array<i64: 1, 128>}, {pipeline_mode = #tpu.pipeline_mode<synchronous>, transform_indices = @transform_3, window_bounds = array<i64: 128, 128>}, {pipeline_mode = #tpu.pipeline_mode<synchronous>, transform_indices = @transform_4, window_bounds = array<i64: 1, 128>}, {pipeline_mode = #tpu.pipeline_mode<synchronous>, transform_indices = @transform_5, window_bounds = array<i64: 128, 128>}, {pipeline_mode = #tpu.pipeline_mode<synchronous>, transform_indices = @transform_6, window_bounds = array<i64: 1, 128>}, {transform_indices = @transform_7, window_bounds = array<i64: 16, 128>}]} {
    %c0 = arith.constant 0 : index
    %c0_0 = arith.constant 0 : index
    %0 = vector.load %arg1[%c0, %c0_0] : memref<16x32xbf16, #tpu.memory_space<vmem>>, vector<16x32xbf16>
    %c0_1 = arith.constant 0 : index
    %c0_2 = arith.constant 0 : index
    %1 = vector.load %arg2[%c0_1, %c0_2] : memref<32x128xbf16, #tpu.memory_space<vmem>>, vector<32x128xbf16>
    %cst = arith.constant dense<0.000000e+00> : vector<16x128xf32>
    %2 = tpu.matmul %0, %1, %cst {dimension_numbers = #tpu.dot_dimension_numbers<[1], [0], [0], [1], [0, 0, 1, 1], [], []>} : vector<16x32xbf16>, vector<32x128xbf16>, vector<16x128xf32> -> vector<16x128xf32>
    %c0_3 = arith.constant 0 : index
    %c0_4 = arith.constant 0 : index
    %3 = vector.load %arg3[%c0_3, %c0_4] : memref<1x128xf32, #tpu.memory_space<vmem>>, vector<1x128xf32>
    %4 = vector.broadcast %3 : vector<1x128xf32> to vector<16x128xf32>
    %5 = arith.addf %2, %4 : vector<16x128xf32>
    %cst_5 = arith.constant 0.000000e+00 : f32
    %6 = vector.broadcast %cst_5 : f32 to vector<16x128xf32>
    %7 = arith.maximumf %5, %6 : vector<16x128xf32>
    %8 = arith.truncf %7 : vector<16x128xf32> to vector<16x128xbf16>
    %c0_6 = arith.constant 0 : index
    %c0_7 = arith.constant 0 : index
    %9 = vector.load %arg4[%c0_6, %c0_7] : memref<128x128xbf16, #tpu.memory_space<vmem>>, vector<128x128xbf16>
    %cst_8 = arith.constant dense<0.000000e+00> : vector<16x128xf32>
    %10 = tpu.matmul %8, %9, %cst_8 {dimension_numbers = #tpu.dot_dimension_numbers<[1], [0], [0], [1], [0, 0, 1, 1], [], []>} : vector<16x128xbf16>, vector<128x128xbf16>, vector<16x128xf32> -> vector<16x128xf32>
    %c0_9 = arith.constant 0 : index
    %c0_10 = arith.constant 0 : index
    %11 = vector.load %arg5[%c0_9, %c0_10] : memref<1x128xf32, #tpu.memory_space<vmem>>, vector<1x128xf32>
    %12 = vector.broadcast %11 : vector<1x128xf32> to vector<16x128xf32>
    %13 = arith.addf %10, %12 : vector<16x128xf32>
    %cst_11 = arith.constant 0.000000e+00 : f32
    %14 = vector.broadcast %cst_11 : f32 to vector<16x128xf32>
    %15 = arith.maximumf %13, %14 : vector<16x128xf32>
    %16 = arith.truncf %15 : vector<16x128xf32> to vector<16x128xbf16>
    %c0_12 = arith.constant 0 : index
    %c0_13 = arith.constant 0 : index
    %17 = vector.load %arg6[%c0_12, %c0_13] : memref<128x128xbf16, #tpu.memory_space<vmem>>, vector<128x128xbf16>
    %cst_14 = arith.constant dense<0.000000e+00> : vector<16x128xf32>
    %18 = tpu.matmul %16, %17, %cst_14 {dimension_numbers = #tpu.dot_dimension_numbers<[1], [0], [0], [1], [0, 0, 1, 1], [], []>} : vector<16x128xbf16>, vector<128x128xbf16>, vector<16x128xf32> -> vector<16x128xf32>
    %c0_15 = arith.constant 0 : index
    %c0_16 = arith.constant 0 : index
    %19 = vector.load %arg7[%c0_15, %c0_16] : memref<1x128xf32, #tpu.memory_space<vmem>>, vector<1x128xf32>
    %20 = vector.broadcast %19 : vector<1x128xf32> to vector<16x128xf32>
    %21 = arith.addf %18, %20 : vector<16x128xf32>
    %c0_17 = arith.constant 0 : index
    %c0_18 = arith.constant 0 : index
    %22 = vector.load %arg8[%c0_17, %c0_18] : memref<16x128xf32, #tpu.memory_space<vmem>>, vector<16x128xf32>
    tpu.vector_store %arg8[%c0_17, %c0_18], %21 {strides = array<i32>} : memref<16x128xf32, #tpu.memory_space<vmem>>, vector<16x128xf32>,
    return
  }
  func.func @transform_0(%arg0: i32) -> (i32, i32) {
    %c0_i32 = arith.constant 0 : i32
    %c0_i32_0 = arith.constant 0 : i32
    return %arg0, %c0_i32 : i32, i32
  }
  func.func @transform_1(%arg0: i32) -> (i32, i32) {
    %c0_i32 = arith.constant 0 : i32
    %c0_i32_0 = arith.constant 0 : i32
    %c0_i32_1 = arith.constant 0 : i32
    return %c0_i32, %c0_i32_0 : i32, i32
  }
  func.func @transform_2(%arg0: i32) -> (i32, i32) {
    %c0_i32 = arith.constant 0 : i32
    %c0_i32_0 = arith.constant 0 : i32
    %c0_i32_1 = arith.constant 0 : i32
    return %c0_i32, %c0_i32_0 : i32, i32
  }
  func.func @transform_3(%arg0: i32) -> (i32, i32) {
    %c0_i32 = arith.constant 0 : i32
    %c0_i32_0 = arith.constant 0 : i32
    %c0_i32_1 = arith.constant 0 : i32
    return %c0_i32, %c0_i32_0 : i32, i32
  }
  func.func @transform_4(%arg0: i32) -> (i32, i32) {
    %c0_i32 = arith.constant 0 : i32
    %c0_i32_0 = arith.constant 0 : i32
    %c0_i32_1 = arith.constant 0 : i32
    return %c0_i32, %c0_i32_0 : i32, i32
  }
  func.func @transform_5(%arg0: i32) -> (i32, i32) {
    %c0_i32 = arith.constant 0 : i32
    %c0_i32_0 = arith.constant 0 : i32
    %c0_i32_1 = arith.constant 0 : i32
    return %c0_i32, %c0_i32_0 : i32, i32
  }
  func.func @transform_6(%arg0: i32) -> (i32, i32) {
    %c0_i32 = arith.constant 0 : i32
    %c0_i32_0 = arith.constant 0 : i32
    %c0_i32_1 = arith.constant 0 : i32
    return %c0_i32, %c0_i32_0 : i32, i32
  }
  func.func @transform_7(%arg0: i32) -> (i32, i32) {
    %c0_i32 = arith.constant 0 : i32
    %c0_i32_0 = arith.constant 0 : i32
    return %arg0, %c0_i32 : i32, i32
  }
}

</mosaic_0001>

<bundles_post_ra>
// kernel: dnn_forward.1
= control target key start
LH: loop header
LB: loop body
LE: loop exit
PB: predicated region body
PF: predicated region fallthrough
CT: control target
= control target key end

     0   :  { %12 = vsyncpa [#allocation3], 0  ;;  %s651_s0 = inlined_call_operand.vmem [shape: bf16[16,32], index: 0, kind: input, shape index: {}]   ;;  %s652_s1 = inlined_call_operand.vmem [shape: bf16[32,128], index: 1, kind: input, shape index: {}]   ;;  %s653_s2 = inlined_call_operand.vmem [shape: f32[1,128], index: 2, kind: input, shape index: {}]   ;;  %s654_s3 = inlined_call_operand.hbm [shape: bf16[128,128], index: 3, kind: input, shape index: {}]   ;;  %s655_s4 = inlined_call_operand.vmem [shape: f32[1,128], index: 4, kind: input, shape index: {}]   ;;  %s656_s5 = inlined_call_operand.hbm [shape: bf16[128,128], index: 5, kind: input, shape index: {}]   ;;  %s657_s6 = inlined_call_operand.vmem [shape: f32[1,128], index: 6, kind: input, shape index: {}]   ;;  %s658_s7 = inlined_call_operand.vmem [shape: f32[16,128], index: 7, kind: output, shape index: {}]  }
   0x1   :  { %13 = vsyncpa [#allocation5], 0  ;;  %s533_s24 = smov [#allocation2]   ;;  %s485_s28 = scalar_lea.hbm %s654_s3, 1024 }
   0x2   :  { %s25_s25 = sshll.u32 %s533_s24, 4  ;;  %p486_p0 = scmp.ne.s32.totalorder %s654_s3, %s485_s28  ;;  %s26_s25 = int_to_ptr.vmem [resolvable:$true] %s25_s25 }
   0x3   :  { %p489_p1 = scmp.lt.u32.totalorder %s485_s28, %s654_s3 }
   0x5   :  { %p491_p2 = pnand %p489_p1, %p486_p0 }
   0x7   :  { %494 = shalt.err (!%p491_p2)
}
   0x8   :  { %s495_s10 = scalar_lea.vmem %s26_s25, 1024  ;;  %p500_p4 = scmp.lt.s32.totalorder %s26_s25, %s26_s25 }
   0x9   :  { %p496_p3 = scmp.ne.s32.totalorder %s26_s25, %s495_s10  ;;  %p501_p5 = scmp.lt.s32.totalorder %s495_s10, %s495_s10 }
   0xb   :  { %p502_p6 = por %p501_p5, %p500_p4 }
   0xd   :  { %p503_p7 = pnand %p502_p6, %p496_p3 }
   0xf   :  { %506 = shalt.err (!%p503_p7)
}
  0x10   :  { %s534_s11 = smov 64   ;;  %s535_s12 = smov 4  }
  0x11   :  { %31 = dma.hbm_to_vmem [thread:$0]  %s654_s3, 1024, %s26_s25, [#allocation3], %s534_s11, %s534_s11, %s535_s12  }
  0x12   :  { %s536_s15 = smov [#allocation4]   ;;  %s507_s19 = scalar_lea.hbm %s656_s5, 1024 }
  0x13   :  { %s39_s16 = sshll.u32 %s536_s15, 4  ;;  %p508_p8 = scmp.ne.s32.totalorder %s656_s5, %s507_s19  ;;  %s40_s16 = int_to_ptr.vmem [resolvable:$true] %s39_s16 }
  0x14   :  { %p511_p9 = scmp.lt.u32.totalorder %s507_s19, %s656_s5 }
  0x16   :  { %p513_p10 = pnand %p511_p9, %p508_p8 }
  0x18   :  { %516 = shalt.err (!%p513_p10)
}
  0x19   :  { %s517_s24 = scalar_lea.vmem %s40_s16, 1024  ;;  %p522_p12 = scmp.lt.s32.totalorder %s40_s16, %s40_s16 }
  0x1a   :  { %p518_p11 = scmp.ne.s32.totalorder %s40_s16, %s517_s24  ;;  %p523_p13 = scmp.lt.s32.totalorder %s517_s24, %s517_s24 }
  0x1c   :  { %p524_p0 = por %p523_p13, %p522_p12 }
  0x1e   :  { %p525_p1 = pnand %p524_p0, %p518_p11 }
  0x20   :  { %528 = shalt.err (!%p525_p1)
}
  0x21   :  { %45 = dma.hbm_to_vmem [thread:$0]  %s656_s5, 1024, %s40_s16, [#allocation5], %s534_s11, %s534_s11, %s535_s12  }
  0x22   :  { %529 = dma.done.wait [#allocation3], 1024  }
  0x23   :  { %530 = vsyncadd [#allocation3], 4294966272 }
  0x24   :  { %531 = dma.done.wait [#allocation5], 1024  }
  0x25   :  { %532 = vsyncadd [#allocation5], 4294966272  ;;  %v537_v0 = vmov 0.0   ;;  %vm538_vm0 = vmmov 0   ;;  %v466_v1 = vld [vmem:[%s652_s1] sm:$0xff]   ;;  %v467_v2 = vld [vmem:[%s652_s1 + $0x8] sm:$0xff]  }
  0x26   :  { %412 = vmatprep.subr.bf16.mxu0 %v537_v0  ;;  %416 = vmatprep.mubr.msk.bf16.mxu0 %vm538_vm0, %v537_v0  ;;  %v469_v3 = vld [vmem:[#allocation2] sm:$0xff]   ;;  %v468_v4 = vld [vmem:[%s651_s0] sm:$0xff]   ;;  %v470_v5 = vld [vmem:[#allocation2 + $0x8] sm:$0xff]   ;;  %vm85_vm1 = vcmask 261120  }
  0x27   :  { %420 = vmatprep.subr.bf16.mxu1 %v537_v0  ;;  %436 = vmatprep.mubr.msk.bf16.mxu1 %vm538_vm0, %v537_v0  ;;  %v471_v6 = vld [vmem:[#allocation2 + $0x10] sm:$0xff]   ;;  %v472_v7 = vld [vmem:[#allocation2 + $0x18] sm:$0xff]   ;;  %v473_v8 = vld [vmem:[#allocation2 + $0x20] sm:$0xff]  }
  0x28   :  { %413 = vmatpush3.bf16.msra.mxu0 %v466_v1  ;;  %421 = vmatpush3.bf16.msra.mxu1 %v469_v3  ;;  %v474_v9 = vld [vmem:[#allocation2 + $0x28] sm:$0xff]   ;;  %v475_v10 = vld [vmem:[#allocation2 + $0x30] sm:$0xff]   ;;  %v476_v11 = vld [vmem:[#allocation2 + $0x38] sm:$0xff]  }
  0x29   :  { %414 = vmatprep.subr.bf16.mxu0 %v537_v0  ;;  %422 = vmatprep.subr.bf16.mxu1 %v537_v0  ;;  %v477_v12 = vld [vmem:[#allocation4] sm:$0xff]   ;;  %v478_v13 = vld [vmem:[#allocation4 + $0x8] sm:$0xff]   ;;  %v479_v14 = vld [vmem:[#allocation4 + $0x10] sm:$0xff]  }
  0x2a   :  { %v480_v15 = vld [vmem:[#allocation4 + $0x18] sm:$0xff]   ;;  %v481_v16 = vld [vmem:[#allocation4 + $0x20] sm:$0xff]   ;;  %v482_v17 = vld [vmem:[#allocation4 + $0x28] sm:$0xff]  }
  0x2b   :  { %v368_v18 = vld [vmem:[%s653_s2] ss:$0 sm:$0xff]  ;;  %v484_v29 = vld [vmem:[#allocation4 + $0x38] sm:$0xff]  }
  0x2c   :  { %415 = vmatpush3.bf16.msra.mxu0 %v467_v2  ;;  %423 = vmatpush3.bf16.msra.mxu1 %v470_v5  ;;  %v483_v28 = vld [vmem:[#allocation4 + $0x30] sm:$0xff]  }
  0x2d   :  { %440 = vmatprep.subr.bf16.mxu0 %v537_v0  ;;  %424 = vmatprep.subr.bf16.mxu1 %v537_v0  ;;  %v373_v30 = vld [vmem:[%s655_s4] ss:$0 sm:$0xff] }
  0x2e   :  { %v382_v40 = vld [vmem:[%s657_s6] ss:$0 sm:$0xff] }
  0x2f   :  { %417 = vmatmul.mubr.msk.bf16.vlgmr.msra.gmra.mrb[0].mxu0 %vm85_vm1, %v468_v4 }
  0x30   :  { %456 = vmatprep.mubr.msk.bf16.mxu0 %vm538_vm0, %v537_v0  ;;  %425 = vmatpush3.bf16.msra.mxu1 %v471_v6 }
  0x31   :  { %426 = vmatprep.subr.bf16.mxu1 %v537_v0  ;;  %441 = vmatpush3.bf16.msra.mxu0 %v477_v12 }
  0x32   :  { %442 = vmatprep.subr.bf16.mxu0 %v537_v0 }
  0x34   :  { %427 = vmatpush3.bf16.msra.mxu1 %v472_v7 }
  0x35   :  { %428 = vmatprep.subr.bf16.mxu1 %v537_v0  ;;  %443 = vmatpush3.bf16.msra.mxu0 %v478_v13 }
  0x36   :  { %444 = vmatprep.subr.bf16.mxu0 %v537_v0 }
  0x38   :  { %429 = vmatpush3.bf16.msra.mxu1 %v473_v8 }
  0x39   :  { %430 = vmatprep.subr.bf16.mxu1 %v537_v0  ;;  %445 = vmatpush3.bf16.msra.mxu0 %v479_v14 }
  0x3a   :  { %446 = vmatprep.subr.bf16.mxu0 %v537_v0 }
  0x3c   :  { %431 = vmatpush3.bf16.msra.mxu1 %v474_v9 }
  0x3d   :  { %432 = vmatprep.subr.bf16.mxu1 %v537_v0  ;;  %447 = vmatpush3.bf16.msra.mxu0 %v480_v15 }
  0x3e   :  { %448 = vmatprep.subr.bf16.mxu0 %v537_v0 }
  0x40   :  { %433 = vmatpush3.bf16.msra.mxu1 %v475_v10 }
  0x41   :  { %434 = vmatprep.subr.bf16.mxu1 %v537_v0  ;;  %449 = vmatpush3.bf16.msra.mxu0 %v481_v16 }
  0x42   :  { %450 = vmatprep.subr.bf16.mxu0 %v537_v0 }
  0x44   :  { %435 = vmatpush3.bf16.msra.mxu1 %v476_v11 }
  0x45   :  { %451 = vmatpush3.bf16.msra.mxu0 %v482_v17 }
  0x46   :  { %452 = vmatprep.subr.bf16.mxu0 %v537_v0 }
  0x49   :  { %453 = vmatpush3.bf16.msra.mxu0 %v483_v28 }
  0x4a   :  { %454 = vmatprep.subr.bf16.mxu0 %v537_v0 }
  0x4d   :  { %455 = vmatpush3.bf16.msra.mxu0 %v484_v29 }
 0x102   :  { %v123_v19 = vpop.f32.mrb[0].mxu0 }
 0x103   :  { %v124_v20 = vadd.f32 %v368_v18, %v123_v19  ;;  %v418_v21 = vpop.f32.mrb[1].mxu0 }
 0x104   :  { %v126_v22 = vpop.f32.mrb[2].mxu0 }
 0x105   :  { %v127_v23 = vadd.f32 %v368_v18, %v126_v22  ;;  %v419_v24 = vpop.f32.mrb[3].mxu0  ;;  %v130_v25 = vmax.f32 %v124_v20, 0.0 }
 0x107   :  { %v131_v26 = vmax.f32 %v127_v23, 0.0 }
 0x109   :  { %v132_v27 = vpack.c.bf16 %v131_v26, %v130_v25 }
 0x10b   :  { %437 = vmatmul.mubr.bf16.vlgmr.msra.gmra.mrb[0].mxu1 %v132_v27 }
 0x1de   :  { %v238_v31 = vpop.f32.mrb[0].mxu1 }
 0x1df   :  { %v239_v32 = vadd.f32 %v373_v30, %v238_v31  ;;  %v438_v33 = vpop.f32.mrb[1].mxu1 }
 0x1e0   :  { %v241_v34 = vpop.f32.mrb[2].mxu1 }
 0x1e1   :  { %v242_v35 = vadd.f32 %v373_v30, %v241_v34  ;;  %v439_v36 = vpop.f32.mrb[3].mxu1  ;;  %v245_v37 = vmax.f32 %v239_v32, 0.0 }
 0x1e3   :  { %v246_v38 = vmax.f32 %v242_v35, 0.0 }
 0x1e5   :  { %v247_v39 = vpack.c.bf16 %v246_v38, %v245_v37 }
 0x1e7   :  { %457 = vmatmul.mubr.bf16.vlgmr.msra.gmra.mrb[4].mxu0 %v247_v39 }
 0x2ba   :  { %v353_v41 = vpop.f32.mrb[4].mxu0 }
 0x2bb   :  { %v354_v42 = vadd.f32 %v382_v40, %v353_v41  ;;  %v458_v43 = vpop.f32.mrb[5].mxu0 }
 0x2bc   :  { %v356_v44 = vpop.f32.mrb[6].mxu0 }
 0x2bd   :  { %360 = vst [vmem:[%s658_s7] sm:$0xff] %v354_v42  ;;  %v357_v45 = vadd.f32 %v382_v40, %v356_v44  ;;  %v459_v46 = vpop.f32.mrb[7].mxu0 }
 0x2bf   :  { %361 = vst [vmem:[%s658_s7 + $0x8] sm:$0xff] %v357_v45 }
 0x2c0   :  { %366 = vsyncpa [#allocation3], 1 }
 0x2c1   :  { %367 = vsyncpa [#allocation5], 1 }

</bundles_post_ra>
